<compile_context>
chip_gen: v7x
topology: tpu7x:2x2x1
jax: 0.10.0
libtpu: 0.0.40
codegen_flags: <defaults>
</compile_context>

<pallas_src>
import jax
import jax.numpy as jnp
import numpy as np
from jax.experimental import pallas as pl
from jax.experimental.pallas import tpu as pltpu


def _sigmoid_f32(x):
    # sigmoid(x) = 0.5 * (tanh(x/2) + 1): transcendental stays on the EUP,
    # no VPU divide, numerically robust for large |x|.
    return 0.5 * (jnp.tanh(0.5 * x) + 1.0)


def _lstm_gate_math(gates, c_prev, H):
    # gates: (B, >=4H) f32 pre-activations in PyTorch order [i | f | g | o].
    sig = _sigmoid_f32(gates)            # one full-vreg EUP pass covers i, f, o
    i = sig[:, 0 * H:1 * H]
    f = sig[:, 1 * H:2 * H]
    o = sig[:, 3 * H:4 * H]
    g = jnp.tanh(gates[:, 2 * H:3 * H])
    c_new = f * c_prev + i * g           # f32 elementwise (VPU), v5e-safe
    h_new = o * jnp.tanh(c_new)
    return h_new, c_new


def lstm_decoder_kernel(x_ref, h0_ref, c0_ref, w_ref, b_ref,
                        out_ref, h_new_ref, c_new_ref):
    B, I = x_ref.shape
    H = h0_ref.shape[-1]
    O = out_ref.shape[1]

    x = x_ref[...]
    h_prev0 = h0_ref[0]
    h_prev1 = h0_ref[1]

    # ---- MXU phase: issue BOTH independent matmuls before any EUP/VPU work. ----
    # Layer-0 fused gates: [x | h_prev0] @ [W_ih0; W_hh0] + b0   (exact f32 bias add).
    inp0 = jnp.concatenate([x, h_prev0], axis=1).astype(jnp.bfloat16)        # (B, I+H)
    gates0 = (jnp.dot(inp0, w_ref[0, :I + H, :],
                      preferred_element_type=jnp.float32)
              + b_ref[0:1, :])                                               # (B, 4H) f32
    # Hoisted layer-1 history matmul: independent of layer-0 activations, so its
    # MXU fill/drain overlaps the layer-0 EUP/VPU work below.
    hist1 = (jnp.dot(h_prev1.astype(jnp.bfloat16), w_ref[1, :H, :],
                     preferred_element_type=jnp.float32)
             + b_ref[1:2, :])                                                # (B, 4H) f32

    # ---- layer-0 activations; eager state stores (off the tail of the chain). ----
    h0n, c0n = _lstm_gate_math(gates0, c0_ref[0], H)
    h_new_ref[0] = h0n
    c_new_ref[0] = c0n

    # ---- layer-1: input matmul + precomputed history. ----
    # TODO(synk): on v7x the `+ hist1` could accumulate in-place in the MRB; jnp.dot/Pallas
    # exposes no handle for that, so the portable VPU add is used (free on v5e/v6e anyway).
    gates1 = jnp.dot(h0n.astype(jnp.bfloat16), w_ref[2, :H, :],
                     preferred_element_type=jnp.float32) + hist1
    h1n, c1n = _lstm_gate_math(gates1, c0_ref[1], H)
    h_new_ref[1] = h1n
    c_new_ref[1] = c1n

    # ---- linear head: proj = h1n @ W_lin + b_lin (columns >= O are zero-padded). ----
    proj = jnp.dot(h1n.astype(jnp.bfloat16), w_ref[3, :H, :],
                   preferred_element_type=jnp.float32) + b_ref[2:3, :]
    out_ref[...] = proj[:, :O]


def lstm_decoder_forward(x, h0, c0, w_packed, b_packed):
    B, I = x.shape
    L, _, H = h0.shape
    assert L == 2
    vmem = pl.BlockSpec(memory_space=pltpu.MemorySpace.VMEM)

    # No grid: whole problem (~60 KiB) fits one VMEM tile on all generations
    # (incl. v7x 64 MiB); any grid step or cross-TC split would be pure overhead.
    out, h_new, c_new = pl.pallas_call(
        lstm_decoder_kernel,
        out_shape=(jax.ShapeDtypeStruct((B, I + 2), jnp.float32),
                   jax.ShapeDtypeStruct((L, B, H), jnp.float32),
                   jax.ShapeDtypeStruct((L, B, H), jnp.float32)),
        in_specs=[vmem, vmem, vmem, vmem, vmem],
        out_specs=(vmem, vmem, vmem),
    )(x, h0, c0, w_packed, b_packed)
    return out, h_new, c_new


def pack_weights(p, input_size, hidden_size):
    """Pack the four matmul weights into one (4, K, C) bf16 slab.

    Slab index 0: rows [0:I)=W_ih0^T, [I:I+H)=W_hh0^T           (layer-0 fused)
    Slab index 1: rows [0:H)=W_hh1^T                            (hoisted history matmul)
    Slab index 2: rows [0:H)=W_ih1^T                            (layer-1 input matmul)
    Slab index 3: rows [0:H)=W_lin^T (cols >= I+2 zero)          (linear head)
    All unused rows/cols are zero (0-weight x finite input contributes exact 0).
    Expects weights PRE-TRANSPOSED to (in_features, 4H) in PyTorch gate order i,f,g,o.
    """
    I, H = input_size, hidden_size
    G, O = 4 * H, I + 2
    C = max(G, O)                                    # keep 128: latency-bound, don't pad to 256
    K = ((max(I + H, H) + 15) // 16) * 16            # bf16 sublane-aligned contraction

    assert p["w_ih0"].shape == (I, G), "expect pre-transposed (in_features, 4H), gate order i,f,g,o"
    assert p["w_hh0"].shape == (H, G)
    assert p["w_ih1"].shape == (H, G)
    assert p["w_hh1"].shape == (H, G)
    assert p["w_lin"].shape == (H, O)

    W = jnp.zeros((4, K, C), jnp.float32)
    W = W.at[0, 0:I, 0:G].set(p["w_ih0"])
    W = W.at[0, I:I + H, 0:G].set(p["w_hh0"])
    W = W.at[1, 0:H, 0:G].set(p["w_hh1"])
    W = W.at[2, 0:H, 0:G].set(p["w_ih1"])
    W = W.at[3, 0:H, 0:O].set(p["w_lin"])
    return W.astype(jnp.bfloat16)


def pack_biases(p, input_size, hidden_size):
    """Exact-f32 biases, one (3, C) array: row0 = b_ih0+b_hh0, row1 = b_ih1+b_hh1, row2 = b_lin."""
    I, H = input_size, hidden_size
    G, O = 4 * H, I + 2
    C = max(G, O)
    assert p["b0"].shape == (G,) and p["b1"].shape == (G,) and p["b_lin"].shape == (O,)
    b = jnp.zeros((3, C), jnp.float32)
    b = b.at[0, 0:G].set(p["b0"])
    b = b.at[1, 0:G].set(p["b1"])
    b = b.at[2, 0:O].set(p["b_lin"])
    return b


def make_params(key, input_size, hidden_size):
    # Deterministic synthetic init (PyTorch-style uniform(-1/sqrt(H), 1/sqrt(H))).
    ks = jax.random.split(key, 10)
    bound = 1.0 / np.sqrt(hidden_size)
    u = lambda k, shape: jax.random.uniform(k, shape, jnp.float32, -bound, bound)
    return {
        # stored pre-transposed: (in_features, 4H); gate order i, f, g, o (PyTorch)
        "w_ih0": u(ks[0], (input_size, 4 * hidden_size)),
        "w_hh0": u(ks[1], (hidden_size, 4 * hidden_size)),
        "b0":    u(ks[2], (4 * hidden_size,)) + u(ks[3], (4 * hidden_size,)),  # b_ih + b_hh
        "w_ih1": u(ks[4], (hidden_size, 4 * hidden_size)),
        "w_hh1": u(ks[5], (hidden_size, 4 * hidden_size)),
        "b1":    u(ks[6], (4 * hidden_size,)) + u(ks[7], (4 * hidden_size,)),
        # Linear(hidden_size, input_size + 2), stored transposed: (H, I+2)
        "w_lin": u(ks[8], (hidden_size, input_size + 2)),
        "b_lin": u(ks[9], (input_size + 2,)),
    }


def reference_forward(x, h0, c0, p):
    # Independent pure-JAX reference of the PyTorch forward, mirroring the kernel's
    # bf16 MXU-input rounding (weights/activations cast to bf16, f32 accumulation,
    # exact-f32 bias add).
    bf = lambda a: a.astype(jnp.bfloat16)

    def cell(inp, h, c, w_ih, w_hh, b):
        gates = (jnp.dot(bf(inp), bf(w_ih), preferred_element_type=jnp.float32)
                 + jnp.dot(bf(h), bf(w_hh), preferred_element_type=jnp.float32)
                 + b)
        H = h.shape[-1]
        i = jax.nn.sigmoid(gates[:, 0 * H:1 * H])
        f = jax.nn.sigmoid(gates[:, 1 * H:2 * H])
        g = jnp.tanh(gates[:, 2 * H:3 * H])
        o = jax.nn.sigmoid(gates[:, 3 * H:4 * H])
        c_new = f * c + i * g
        return o * jnp.tanh(c_new), c_new

    h0n, c0n = cell(x, h0[0], c0[0], p["w_ih0"], p["w_hh0"], p["b0"])
    h1n, c1n = cell(h0n, h0[1], c0[1], p["w_ih1"], p["w_hh1"], p["b1"])
    out = (jnp.dot(bf(h1n), bf(p["w_lin"]), preferred_element_type=jnp.float32)
           + p["b_lin"])
    return out, jnp.stack([h0n, h1n]), jnp.stack([c0n, c1n])


if __name__ == "__main__":
    B = 8            # batch
    INPUT_SIZE = 16  # LSTM input_size
    HIDDEN = 32      # LSTM hidden_size
    L = 2            # num_layers

    key = jax.random.PRNGKey(0)
    kx, kh, kc, kp = jax.random.split(key, 4)
    x = jax.random.normal(kx, (B, INPUT_SIZE), jnp.float32)
    h0 = jax.random.normal(kh, (L, B, HIDDEN), jnp.float32)
    c0 = jax.random.normal(kc, (L, B, HIDDEN), jnp.float32)
    params = make_params(kp, INPUT_SIZE, HIDDEN)
    w_packed = pack_weights(params, INPUT_SIZE, HIDDEN)
    b_packed = pack_biases(params, INPUT_SIZE, HIDDEN)

    out, h_new, c_new = lstm_decoder_forward(x, h0, c0, w_packed, b_packed)
    jax.block_until_ready((out, h_new, c_new))

    ref_out, ref_h, ref_c = reference_forward(x, h0, c0, params)
    # Both paths use bf16 MXU inputs with exact f32 bias; tolerance covers independent
    # bf16 rounding of the recurrent hidden state and f32 summation-order differences.
    assert np.allclose(np.asarray(h_new), np.asarray(ref_h), atol=1e-2, rtol=1e-2)
    assert np.allclose(np.asarray(c_new), np.asarray(ref_c), atol=1e-2, rtol=1e-2)
    assert np.allclose(np.asarray(out), np.asarray(ref_out), atol=1e-2, rtol=1e-2)

    print("KERNEL_OK")
</pallas_src>

<mosaic_0001>
module attributes {stable_mosaic.version = 11 : i64} {
  func.func @lstm_decoder_kernel(%arg0: memref<8x16xf32, #tpu.memory_space<vmem>>, %arg1: memref<2x8x32xf32, #tpu.memory_space<vmem>>, %arg2: memref<2x8x32xf32, #tpu.memory_space<vmem>>, %arg3: memref<4x48x128xbf16, #tpu.memory_space<vmem>>, %arg4: memref<3x128xf32, #tpu.memory_space<vmem>>, %arg5: memref<8x18xf32, #tpu.memory_space<vmem>>, %arg6: memref<2x8x32xf32, #tpu.memory_space<vmem>>, %arg7: memref<2x8x32xf32, #tpu.memory_space<vmem>>) attributes {dimension_semantics = [], scalar_prefetch = 0 : i64, scratch_operands = 0 : i64, tpu.core_type = #tpu.core_type<tc>} {
    %c0 = arith.constant 0 : index
    %c0_0 = arith.constant 0 : index
    %0 = vector.load %arg0[%c0, %c0_0] : memref<8x16xf32, #tpu.memory_space<vmem>>, vector<8x16xf32>
    %c0_1 = arith.constant 0 : index
    %c0_2 = arith.constant 0 : index
    %c0_3 = arith.constant 0 : index
    %1 = vector.load %arg1[%c0_1, %c0_2, %c0_3] : memref<2x8x32xf32, #tpu.memory_space<vmem>>, vector<1x8x32xf32>
    %2 = vector.shape_cast %1 : vector<1x8x32xf32> to vector<8x32xf32>
    %c1 = arith.constant 1 : index
    %c0_4 = arith.constant 0 : index
    %c0_5 = arith.constant 0 : index
    %3 = vector.load %arg1[%c1, %c0_4, %c0_5] : memref<2x8x32xf32, #tpu.memory_space<vmem>>, vector<1x8x32xf32>
    %4 = vector.shape_cast %3 : vector<1x8x32xf32> to vector<8x32xf32>
    %5 = tpu.concatenate %0, %2 in 1 : vector<8x16xf32>, vector<8x32xf32> -> vector<8x48xf32>
    %6 = arith.truncf %5 : vector<8x48xf32> to vector<8x48xbf16>
    %c0_6 = arith.constant 0 : index
    %c0_7 = arith.constant 0 : index
    %c0_8 = arith.constant 0 : index
    %7 = vector.load %arg3[%c0_6, %c0_7, %c0_8] : memref<4x48x128xbf16, #tpu.memory_space<vmem>>, vector<1x48x128xbf16>
    %8 = vector.shape_cast %7 : vector<1x48x128xbf16> to vector<48x128xbf16>
    %cst = arith.constant dense<0.000000e+00> : vector<8x128xf32>
    %9 = tpu.matmul %6, %8, %cst {dimension_numbers = #tpu.dot_dimension_numbers<[1], [0], [0], [1], [0, 0, 1, 1], [], []>} : vector<8x48xbf16>, vector<48x128xbf16>, vector<8x128xf32> -> vector<8x128xf32>
    %c0_9 = arith.constant 0 : index
    %c0_10 = arith.constant 0 : index
    %10 = vector.load %arg4[%c0_9, %c0_10] : memref<3x128xf32, #tpu.memory_space<vmem>>, vector<1x128xf32>
    %11 = vector.broadcast %10 : vector<1x128xf32> to vector<8x128xf32>
    %12 = arith.addf %9, %11 : vector<8x128xf32>
    %13 = arith.truncf %4 : vector<8x32xf32> to vector<8x32xbf16>
    %c1_11 = arith.constant 1 : index
    %c0_12 = arith.constant 0 : index
    %c0_13 = arith.constant 0 : index
    %14 = vector.load %arg3[%c1_11, %c0_12, %c0_13] : memref<4x48x128xbf16, #tpu.memory_space<vmem>>, vector<1x32x128xbf16>
    %15 = vector.shape_cast %14 : vector<1x32x128xbf16> to vector<32x128xbf16>
    %cst_14 = arith.constant dense<0.000000e+00> : vector<8x128xf32>
    %16 = tpu.matmul %13, %15, %cst_14 {dimension_numbers = #tpu.dot_dimension_numbers<[1], [0], [0], [1], [0, 0, 1, 1], [], []>} : vector<8x32xbf16>, vector<32x128xbf16>, vector<8x128xf32> -> vector<8x128xf32>
    %c1_15 = arith.constant 1 : index
    %c0_16 = arith.constant 0 : index
    %17 = vector.load %arg4[%c1_15, %c0_16] : memref<3x128xf32, #tpu.memory_space<vmem>>, vector<1x128xf32>
    %18 = vector.broadcast %17 : vector<1x128xf32> to vector<8x128xf32>
    %19 = arith.addf %16, %18 : vector<8x128xf32>
    %c0_17 = arith.constant 0 : index
    %c0_18 = arith.constant 0 : index
    %c0_19 = arith.constant 0 : index
    %20 = vector.load %arg2[%c0_17, %c0_18, %c0_19] : memref<2x8x32xf32, #tpu.memory_space<vmem>>, vector<1x8x32xf32>
    %21 = vector.shape_cast %20 : vector<1x8x32xf32> to vector<8x32xf32>
    %cst_20 = arith.constant 5.000000e-01 : f32
    %22 = vector.broadcast %cst_20 : f32 to vector<8x128xf32>
    %23 = arith.mulf %22, %12 : vector<8x128xf32>
    %24 = math.tanh %23 : vector<8x128xf32>
    %cst_21 = arith.constant 1.000000e+00 : f32
    %25 = vector.broadcast %cst_21 : f32 to vector<8x128xf32>
    %26 = arith.addf %24, %25 : vector<8x128xf32>
    %cst_22 = arith.constant 5.000000e-01 : f32
    %27 = vector.broadcast %cst_22 : f32 to vector<8x128xf32>
    %28 = arith.mulf %27, %26 : vector<8x128xf32>
    %29 = vector.extract_strided_slice %28 {offsets = [0, 0], sizes = [8, 32], strides = [1, 1]} : vector<8x128xf32> to vector<8x32xf32>
    %30 = vector.extract_strided_slice %28 {offsets = [0, 32], sizes = [8, 32], strides = [1, 1]} : vector<8x128xf32> to vector<8x32xf32>
    %31 = vector.extract_strided_slice %28 {offsets = [0, 96], sizes = [8, 32], strides = [1, 1]} : vector<8x128xf32> to vector<8x32xf32>
    %32 = vector.extract_strided_slice %12 {offsets = [0, 64], sizes = [8, 32], strides = [1, 1]} : vector<8x128xf32> to vector<8x32xf32>
    %33 = math.tanh %32 : vector<8x32xf32>
    %34 = arith.mulf %30, %21 : vector<8x32xf32>
    %35 = arith.mulf %29, %33 : vector<8x32xf32>
    %36 = arith.addf %34, %35 : vector<8x32xf32>
    %37 = math.tanh %36 : vector<8x32xf32>
    %38 = arith.mulf %31, %37 : vector<8x32xf32>
    %c0_23 = arith.constant 0 : index
    %c0_24 = arith.constant 0 : index
    %c0_25 = arith.constant 0 : index
    %39 = vector.load %arg6[%c0_23, %c0_24, %c0_25] : memref<2x8x32xf32, #tpu.memory_space<vmem>>, vector<1x8x32xf32>
    %40 = vector.shape_cast %39 : vector<1x8x32xf32> to vector<8x32xf32>
    %41 = vector.shape_cast %38 : vector<8x32xf32> to vector<1x8x32xf32>
    tpu.vector_store %arg6[%c0_23, %c0_24, %c0_25], %41 {strides = array<i32>} : memref<2x8x32xf32, #tpu.memory_space<vmem>>, vector<1x8x32xf32>,
    %c0_26 = arith.constant 0 : index
    %c0_27 = arith.constant 0 : index
    %c0_28 = arith.constant 0 : index
    %42 = vector.load %arg7[%c0_26, %c0_27, %c0_28] : memref<2x8x32xf32, #tpu.memory_space<vmem>>, vector<1x8x32xf32>
    %43 = vector.shape_cast %42 : vector<1x8x32xf32> to vector<8x32xf32>
    %44 = vector.shape_cast %36 : vector<8x32xf32> to vector<1x8x32xf32>
    tpu.vector_store %arg7[%c0_26, %c0_27, %c0_28], %44 {strides = array<i32>} : memref<2x8x32xf32, #tpu.memory_space<vmem>>, vector<1x8x32xf32>,
    %45 = arith.truncf %38 : vector<8x32xf32> to vector<8x32xbf16>
    %c2 = arith.constant 2 : index
    %c0_29 = arith.constant 0 : index
    %c0_30 = arith.constant 0 : index
    %46 = vector.load %arg3[%c2, %c0_29, %c0_30] : memref<4x48x128xbf16, #tpu.memory_space<vmem>>, vector<1x32x128xbf16>
    %47 = vector.shape_cast %46 : vector<1x32x128xbf16> to vector<32x128xbf16>
    %cst_31 = arith.constant dense<0.000000e+00> : vector<8x128xf32>
    %48 = tpu.matmul %45, %47, %cst_31 {dimension_numbers = #tpu.dot_dimension_numbers<[1], [0], [0], [1], [0, 0, 1, 1], [], []>} : vector<8x32xbf16>, vector<32x128xbf16>, vector<8x128xf32> -> vector<8x128xf32>
    %49 = arith.addf %48, %19 : vector<8x128xf32>
    %c1_32 = arith.constant 1 : index
    %c0_33 = arith.constant 0 : index
    %c0_34 = arith.constant 0 : index
    %50 = vector.load %arg2[%c1_32, %c0_33, %c0_34] : memref<2x8x32xf32, #tpu.memory_space<vmem>>, vector<1x8x32xf32>
    %51 = vector.shape_cast %50 : vector<1x8x32xf32> to vector<8x32xf32>
    %cst_35 = arith.constant 5.000000e-01 : f32
    %52 = vector.broadcast %cst_35 : f32 to vector<8x128xf32>
    %53 = arith.mulf %52, %49 : vector<8x128xf32>
    %54 = math.tanh %53 : vector<8x128xf32>
    %cst_36 = arith.constant 1.000000e+00 : f32
    %55 = vector.broadcast %cst_36 : f32 to vector<8x128xf32>
    %56 = arith.addf %54, %55 : vector<8x128xf32>
    %cst_37 = arith.constant 5.000000e-01 : f32
    %57 = vector.broadcast %cst_37 : f32 to vector<8x128xf32>
    %58 = arith.mulf %57, %56 : vector<8x128xf32>
    %59 = vector.extract_strided_slice %58 {offsets = [0, 0], sizes = [8, 32], strides = [1, 1]} : vector<8x128xf32> to vector<8x32xf32>
    %60 = vector.extract_strided_slice %58 {offsets = [0, 32], sizes = [8, 32], strides = [1, 1]} : vector<8x128xf32> to vector<8x32xf32>
    %61 = vector.extract_strided_slice %58 {offsets = [0, 96], sizes = [8, 32], strides = [1, 1]} : vector<8x128xf32> to vector<8x32xf32>
    %62 = vector.extract_strided_slice %49 {offsets = [0, 64], sizes = [8, 32], strides = [1, 1]} : vector<8x128xf32> to vector<8x32xf32>
    %63 = math.tanh %62 : vector<8x32xf32>
    %64 = arith.mulf %60, %51 : vector<8x32xf32>
    %65 = arith.mulf %59, %63 : vector<8x32xf32>
    %66 = arith.addf %64, %65 : vector<8x32xf32>
    %67 = math.tanh %66 : vector<8x32xf32>
    %68 = arith.mulf %61, %67 : vector<8x32xf32>
    %c1_38 = arith.constant 1 : index
    %c0_39 = arith.constant 0 : index
    %c0_40 = arith.constant 0 : index
    %69 = vector.load %arg6[%c1_38, %c0_39, %c0_40] : memref<2x8x32xf32, #tpu.memory_space<vmem>>, vector<1x8x32xf32>
    %70 = vector.shape_cast %69 : vector<1x8x32xf32> to vector<8x32xf32>
    %71 = vector.shape_cast %68 : vector<8x32xf32> to vector<1x8x32xf32>
    tpu.vector_store %arg6[%c1_38, %c0_39, %c0_40], %71 {strides = array<i32>} : memref<2x8x32xf32, #tpu.memory_space<vmem>>, vector<1x8x32xf32>,
    %c1_41 = arith.constant 1 : index
    %c0_42 = arith.constant 0 : index
    %c0_43 = arith.constant 0 : index
    %72 = vector.load %arg7[%c1_41, %c0_42, %c0_43] : memref<2x8x32xf32, #tpu.memory_space<vmem>>, vector<1x8x32xf32>
    %73 = vector.shape_cast %72 : vector<1x8x32xf32> to vector<8x32xf32>
    %74 = vector.shape_cast %66 : vector<8x32xf32> to vector<1x8x32xf32>
    tpu.vector_store %arg7[%c1_41, %c0_42, %c0_43], %74 {strides = array<i32>} : memref<2x8x32xf32, #tpu.memory_space<vmem>>, vector<1x8x32xf32>,
    %75 = arith.truncf %68 : vector<8x32xf32> to vector<8x32xbf16>
    %c3 = arith.constant 3 : index
    %c0_44 = arith.constant 0 : index
    %c0_45 = arith.constant 0 : index
    %76 = vector.load %arg3[%c3, %c0_44, %c0_45] : memref<4x48x128xbf16, #tpu.memory_space<vmem>>, vector<1x32x128xbf16>
    %77 = vector.shape_cast %76 : vector<1x32x128xbf16> to vector<32x128xbf16>
    %cst_46 = arith.constant dense<0.000000e+00> : vector<8x128xf32>
    %78 = tpu.matmul %75, %77, %cst_46 {dimension_numbers = #tpu.dot_dimension_numbers<[1], [0], [0], [1], [0, 0, 1, 1], [], []>} : vector<8x32xbf16>, vector<32x128xbf16>, vector<8x128xf32> -> vector<8x128xf32>
    %c2_47 = arith.constant 2 : index
    %c0_48 = arith.constant 0 : index
    %79 = vector.load %arg4[%c2_47, %c0_48] : memref<3x128xf32, #tpu.memory_space<vmem>>, vector<1x128xf32>
    %80 = vector.broadcast %79 : vector<1x128xf32> to vector<8x128xf32>
    %81 = arith.addf %78, %80 : vector<8x128xf32>
    %82 = vector.extract_strided_slice %81 {offsets = [0, 0], sizes = [8, 18], strides = [1, 1]} : vector<8x128xf32> to vector<8x18xf32>
    %c0_49 = arith.constant 0 : index
    %c0_50 = arith.constant 0 : index
    %83 = vector.load %arg5[%c0_49, %c0_50] : memref<8x18xf32, #tpu.memory_space<vmem>>, vector<8x18xf32>
    tpu.vector_store %arg5[%c0_49, %c0_50], %82 {strides = array<i32>} : memref<8x18xf32, #tpu.memory_space<vmem>>, vector<8x18xf32>,
    return
  }
}

</mosaic_0001>

<bundles_post_ra>
// kernel: tpu_custom_call.1
= control target key start
LH: loop header
LB: loop body
LE: loop exit
PB: predicated region body
PF: predicated region fallthrough
CT: control target
= control target key end

     0   :  { %13 = vsyncpa [#allocation3], 0  ;;  %s958_s0 = inlined_call_operand.hbm [shape: f32[8,16], index: 0, kind: input, shape index: {}]   ;;  %s959_s1 = inlined_call_operand.hbm [shape: f32[2,8,32], index: 1, kind: input, shape index: {}]   ;;  %s960_s2 = inlined_call_operand.hbm [shape: f32[2,8,32], index: 2, kind: input, shape index: {}]   ;;  %s961_s3 = inlined_call_operand.hbm [shape: bf16[4,48,128], index: 3, kind: input, shape index: {}]   ;;  %s962_s4 = inlined_call_operand.vmem [shape: f32[3,128], index: 4, kind: input, shape index: {}]   ;;  %s963_s5 = inlined_call_operand.hbm [shape: f32[8,18], index: 5, kind: output, shape index: {0}]   ;;  %s964_s6 = inlined_call_operand.hbm [shape: f32[2,8,32], index: 6, kind: output, shape index: {1}]   ;;  %s965_s7 = inlined_call_operand.hbm [shape: f32[2,8,32], index: 7, kind: output, shape index: {2}]  }
   0x1   :  { %14 = vsyncpa [#allocation6], 0 }
   0x2   :  { %15 = vsyncpa [#allocation9], 0 }
   0x3   :  { %16 = vsyncpa [#allocation4], 0 }
   0x4   :  { %17 = vsyncpa [#allocation12], 0  ;;  %s759_s24 = smov [#allocation5]   ;;  %s595_s28 = scalar_lea.hbm %s959_s1, 256 }
   0x5   :  { %s33_s25 = sshll.u32 %s759_s24, 4  ;;  %p596_p0 = scmp.ne.s32.totalorder %s959_s1, %s595_s28  ;;  %s34_s25 = int_to_ptr.vmem [resolvable:$true] %s33_s25 }
   0x6   :  { %p599_p1 = scmp.lt.u32.totalorder %s595_s28, %s959_s1 }
   0x8   :  { %p601_p2 = pnand %p599_p1, %p596_p0 }
   0xa   :  { %604 = shalt.err (!%p601_p2)
}
   0xb   :  { %s605_s10 = scalar_lea.vmem %s34_s25, 256  ;;  %p610_p4 = scmp.lt.s32.totalorder %s34_s25, %s34_s25 }
   0xc   :  { %p606_p3 = scmp.ne.s32.totalorder %s34_s25, %s605_s10  ;;  %p611_p5 = scmp.lt.s32.totalorder %s605_s10, %s605_s10 }
   0xe   :  { %p612_p6 = por %p611_p5, %p610_p4 }
  0x10   :  { %p613_p7 = pnand %p612_p6, %p606_p3 }
  0x12   :  { %616 = shalt.err (!%p613_p7)
}
  0x13   :  { %s760_s11 = smov 128   ;;  %s761_s12 = smov 8  }
  0x14   :  { %39 = dma.hbm_to_vmem [thread:$0]  %s959_s1, 256, %s34_s25, [#allocation6], %s760_s11, %s760_s11, %s761_s12  }
  0x15   :  { %s762_s15 = smov [#allocation2]   ;;  %s763_s17 = smov [#allocation7]  }
  0x16   :  { %s24_s16 = sshll.u32 %s762_s15, 4  ;;  %s45_s18 = sshll.u32 %s763_s17, 4  ;;  %s25_s16 = int_to_ptr.vmem [resolvable:$true] %s24_s16  ;;  %s46_s18 = int_to_ptr.vmem [resolvable:$true] %s45_s18 }
  0x17   :  { %s617_s21 = scalar_lea.hbm %s958_s0, 128 }
  0x18   :  { %p618_p8 = scmp.ne.s32.totalorder %s958_s0, %s617_s21  ;;  %p621_p9 = scmp.lt.u32.totalorder %s617_s21, %s958_s0 }
  0x1a   :  { %p623_p10 = pnand %p621_p9, %p618_p8 }
  0x1c   :  { %626 = shalt.err (!%p623_p10)
}
  0x1d   :  { %s627_s1 = scalar_lea.vmem %s25_s16, 128  ;;  %p632_p12 = scmp.lt.s32.totalorder %s25_s16, %s25_s16 }
  0x1e   :  { %p628_p11 = scmp.ne.s32.totalorder %s25_s16, %s627_s1  ;;  %p633_p13 = scmp.lt.s32.totalorder %s627_s1, %s627_s1 }
  0x20   :  { %p634_p0 = por %p633_p13, %p632_p12 }
  0x22   :  { %p635_p1 = pnand %p634_p0, %p628_p11 }
  0x24   :  { %638 = shalt.err (!%p635_p1)
}
  0x25   :  { %27 = dma.hbm_to_vmem [thread:$0]  %s958_s0, 128, %s25_s16, [#allocation3]  }
  0x26   :  { %s639_s30 = scalar_lea.hbm %s960_s2, 256 }
  0x27   :  { %p640_p2 = scmp.ne.s32.totalorder %s960_s2, %s639_s30  ;;  %p643_p3 = scmp.lt.u32.totalorder %s639_s30, %s960_s2 }
  0x29   :  { %p645_p4 = pnand %p643_p3, %p640_p2 }
  0x2b   :  { %648 = shalt.err (!%p645_p4)
}
  0x2c   :  { %s649_s14 = scalar_lea.vmem %s46_s18, 256  ;;  %p654_p6 = scmp.lt.s32.totalorder %s46_s18, %s46_s18 }
  0x2d   :  { %p650_p5 = scmp.ne.s32.totalorder %s46_s18, %s649_s14  ;;  %p655_p7 = scmp.lt.s32.totalorder %s649_s14, %s649_s14 }
  0x2f   :  { %p656_p8 = por %p655_p7, %p654_p6 }
  0x31   :  { %p657_p9 = pnand %p656_p8, %p650_p5 }
  0x33   :  { %660 = shalt.err (!%p657_p9)
}
  0x34   :  { %51 = dma.hbm_to_vmem [thread:$0]  %s960_s2, 256, %s46_s18, [#allocation6], %s760_s11, %s760_s11, %s761_s12  }
  0x35   :  { %s764_s16 = smov [#allocation8]   ;;  %s661_s21 = scalar_lea.hbm %s961_s3, 1536 }
  0x36   :  { %s57_s17 = sshll.u32 %s764_s16, 4  ;;  %p662_p10 = scmp.ne.s32.totalorder %s961_s3, %s661_s21  ;;  %s58_s17 = int_to_ptr.vmem [resolvable:$true] %s57_s17 }
  0x37   :  { %p665_p11 = scmp.lt.u32.totalorder %s661_s21, %s961_s3 }
  0x39   :  { %p667_p12 = pnand %p665_p11, %p662_p10 }
  0x3b   :  { %670 = shalt.err (!%p667_p12)
}
  0x3c   :  { %s671_s1 = scalar_lea.vmem %s58_s17, 1536  ;;  %p676_p0 = scmp.lt.s32.totalorder %s58_s17, %s58_s17 }
  0x3d   :  { %p672_p13 = scmp.ne.s32.totalorder %s58_s17, %s671_s1  ;;  %p677_p1 = scmp.lt.s32.totalorder %s671_s1, %s671_s1 }
  0x3f   :  { %p678_p2 = por %p677_p1, %p676_p0 }
  0x41   :  { %p679_p3 = pnand %p678_p2, %p672_p13 }
  0x43   :  { %682 = shalt.err (!%p679_p3)
}
  0x44   :  { %s765_s2 = smov 64   ;;  %s766_s18 = smov 4  }
  0x45   :  { %63 = dma.hbm_to_vmem [thread:$0]  %s961_s3, 1536, %s58_s17, [#allocation9], %s765_s2, %s765_s2, %s766_s18  }
  0x46   :  { %749 = dma.done.wait [#allocation3], 128  }
  0x47   :  { %750 = vsyncadd [#allocation3], 4294967168 }
  0x48   :  { %751 = dma.done.wait [#allocation6], 512  }
  0x49   :  { %752 = vsyncadd [#allocation6], 4294966784 }
  0x4a   :  { %753 = dma.done.wait [#allocation9], 1536  }
  0x4b   :  { %754 = vsyncadd [#allocation9], 4294965760  ;;  %v767_v0 = vmov 0.0   ;;  %vm768_vm0 = vmmov 0   ;;  %v80_v1 = vld [vmem:[#allocation5] sm:$0xff]  ;;  %s769_s3 = smov 16  }
  0x4c   :  { %519 = vmatprep.subr.bf16.mxu0 %v767_v0  ;;  %525 = vmatprep.mubr.msk.bf16.mxu0 %vm768_vm0, %v767_v0  ;;  %v574_v2 = vld [vmem:[#allocation8] sm:$0xff]   ;;  %v575_v3 = vld [vmem:[#allocation8 + $0x8] sm:$0xff]   ;;  %v230_v4 = vld [vmem:[#allocation7] sm:$0xff]  ;;  %s770_s28 = smov 32   ;;  %vm87_vm1 = vcmask 130048   ;;  %vm119_vm2 = vcmask 392192  }
  0x4d   :  { %529 = vmatprep.subr.bf16.mxu1 %v767_v0  ;;  %533 = vmatprep.mubr.msk.bf16.mxu1 %vm768_vm0, %v767_v0  ;;  %v576_v5 = vld [vmem:[#allocation8 + $0x10] sm:$0xff]   ;;  %v79_v6 = vld [vmem:[#allocation2] sm:$0xff]  ;;  %v578_v28 = vld [vmem:[#allocation8 + $0x20] sm:$0xff]   ;;  %vm186_vm3 = vcmask 261120   ;;  %s771_s10 = smov 96   ;;  %s772_s13 = smov [#allocation11]  }
  0x4e   :  { %84 = vrot.lane.b32.xlu0 %v80_v1, %s769_s3  ;;  %520 = vmatpush3.bf16.msra.mxu0 %v574_v2  ;;  %v490_v10 = vld [vmem:[%s962_s4] ss:$0 sm:$0xff]  ;;  %v82_v29 = vld [vmem:[#allocation5 + $0x8] sm:$0xff]  ;;  %v579_v31 = vld [vmem:[#allocation8 + $0x30] sm:$0xff]   ;;  %s457_s14 = sshll.u32 %s772_s13, 4  ;;  %s458_s14 = int_to_ptr.vmem [resolvable:$true] %s457_s14 }
  0x4f   :  { %521 = vmatprep.subr.bf16.mxu0 %v767_v0  ;;  %237 = vrot.lane.b32.xlu1 %v230_v4, %s770_s28  ;;  %v577_v27 = vld [vmem:[#allocation8 + $0x18] sm:$0xff]   ;;  %v163_v30 = vpack.c.bf16 %v82_v29, %v82_v29  ;;  %v581_v57 = vld [vmem:[#allocation8 + $0x48] sm:$0xff]   ;;  %v582_v58 = vld [vmem:[#allocation8 + $0x50] sm:$0xff]   ;;  %s683_s0 = scalar_lea.vmem %s458_s14, 256  ;;  %p688_p5 = scmp.lt.s32.totalorder %s458_s14, %s458_s14 }
  0x50   :  { %530 = vmatpush3.bf16.msra.mxu1 %v577_v27  ;;  %v580_v33 = vld [vmem:[#allocation8 + $0x38] sm:$0xff]   ;;  %p684_p4 = scmp.ne.s32.totalorder %s458_s14, %s683_s0  ;;  %p689_p6 = scmp.lt.s32.totalorder %s683_s0, %s683_s0 }
  0x51   :  { %531 = vmatprep.subr.bf16.mxu1 %v767_v0  ;;  %v332_v37 = vld [vmem:[#allocation7 + $0x8] sm:$0xff] }
  0x52   :  { %522 = vmatpush3.bf16.msra.mxu0 %v575_v3  ;;  %v495_v39 = vld [vmem:[%s962_s4 + $0x1] ss:$0 sm:$0xff]  ;;  %p690_p7 = por %p689_p6, %p688_p5 }
  0x53   :  { %523 = vmatprep.subr.bf16.mxu0 %v767_v0 }
  0x54   :  { %532 = vmatpush3.bf16.msra.mxu1 %v578_v28  ;;  %p691_p8 = pnand %p690_p7, %p684_p4 }
  0x55   :  { %537 = vmatprep.subr.bf16.mxu1 %v767_v0 }
  0x56   :  { %524 = vmatpush3.bf16.msra.mxu0 %v576_v5 }
  0x57   :  { %545 = vmatprep.subr.bf16.mxu0 %v767_v0  ;;  %534 = vmatmul.mubr.msk.bf16.vlgmr.msra.gmra.mrb[0].mxu1 %vm186_vm3, %v163_v30 }
  0x58   :  { %538 = vmatpush3.bf16.msra.mxu1 %v579_v31  ;;  %541 = vmatprep.mubr.msk.bf16.mxu1 %vm768_vm0, %v767_v0 }
  0x59   :  { %539 = vmatprep.subr.bf16.mxu1 %v767_v0 }
  0x5c   :  { %540 = vmatpush3.bf16.msra.mxu1 %v580_v33 }
  0xc0   :  { %v85_v7 = vpop.permute.xlu0 %84 }
  0xc1   :  { %v88_v8 = vsel %vm87_vm1, %v79_v6, %v85_v7  ;;  %v238_v23 = vpop.permute.xlu1 %237 }
  0xc2   :  { %v89_v9 = vpack.c.bf16 %v88_v8, %v88_v8 }
  0xc4   :  { %526 = vmatmul.mubr.msk.bf16.vlgmr.msra.gmra.mrb[0].mxu0 %vm119_vm2, %v89_v9 }
  0xc5   :  { %549 = vmatprep.mubr.msk.bf16.mxu0 %vm768_vm0, %v767_v0  ;;  %546 = vmatpush3.bf16.msra.mxu0 %v581_v57 }
  0xc6   :  { %547 = vmatprep.subr.bf16.mxu0 %v767_v0 }
  0xc9   :  { %548 = vmatpush3.bf16.msra.mxu0 %v582_v58 }
 0x197   :  { %v157_v11 = vpop.f32.mrb[0].mxu0 }
 0x198   :  { %v158_v12 = vadd.f32 %v490_v10, %v157_v11  ;;  %v527_v13 = vpop.f32.mrb[1].mxu0 }
 0x199   :  { %v160_v14 = vpop.f32.mrb[2].mxu0 }
 0x19a   :  { %583 = vtanh.f32 %v158_v12  ;;  %v528_v15 = vpop.f32.mrb[3].mxu0  ;;  %v231_v17 = vmul.f32 0.5, %v158_v12 }
 0x19c   :  { %585 = vtanh.f32 %v231_v17 }
 0x1a4   :  { %v584_v16 = vpop.eup %583 }
 0x1a5   :  { %242 = vrot.lane.b32.xlu0 %v584_v16, %s765_s2 }
 0x1a6   :  { %v586_v18 = vpop.eup %585 }
 0x1a7   :  { %v233_v19 = vadd.f32 1.0, %v586_v18 }
 0x1a9   :  { %v234_v20 = vmul.f32 0.5, %v233_v19 }
 0x1ab   :  { %v240_v24 = vmul.f32 %v238_v23, %v234_v20 }
 0x217   :  { %v243_v21 = vpop.permute.xlu0 %242 }
 0x218   :  { %v245_v22 = vmul.f32 %v243_v21, %v234_v20 }
 0x21a   :  { %247 = vrot.lane.b32.xlu1 %v245_v22, %s770_s28 }
 0x28c   :  { %v248_v25 = vpop.permute.xlu1 %247 }
 0x28d   :  { %v250_v26 = vadd.f32 %v248_v25, %v240_v24 }
 0x28f   :  { %587 = vtanh.f32 %v250_v26 }
 0x299   :  { %v588_v32 = vpop.eup %587 }
 0x29a   :  { %253 = vrot.lane.b32.xlu0 %v588_v32, %s765_s2 }
 0x30c   :  { %v254_v34 = vpop.permute.xlu0 %253 }
 0x30d   :  { %v256_v35 = vmul.f32 %v254_v34, %v234_v20 }
 0x30f   :  { %v267_v36 = vpack.c.bf16 %v256_v35, %v256_v35 }
 0x311   :  { %274 = vrot.lane.b32.xlu1 %v267_v36, %s770_s28 }
 0x315   :  { %339 = vrot.lane.b32.xlu1 %v332_v37, %s770_s28 }
 0x383   :  { %v275_v38 = vpop.permute.xlu1 %274 }
 0x384   :  { %542 = vmatmul.mubr.msk.bf16.vlgmr.msra.gmra.mrb[0].mxu1 %vm186_vm3, %v275_v38 }
 0x387   :  { %v340_v52 = vpop.permute.xlu1 %339 }
 0x457   :  { %v325_v40 = vpop.f32.mrb[0].mxu1 }
 0x458   :  { %v553_v41 = vadd.f32 %v495_v39, %v325_v40  ;;  %v543_v42 = vpop.f32.mrb[1].mxu1 }
 0x459   :  { %v328_v43 = vpop.f32.mrb[2].mxu1 }
 0x45a   :  { %589 = vtanh.f32 %v553_v41  ;;  %v544_v44 = vpop.f32.mrb[3].mxu1  ;;  %v333_v46 = vmul.f32 0.5, %v553_v41 }
 0x45c   :  { %591 = vtanh.f32 %v333_v46 }
 0x464   :  { %v590_v45 = vpop.eup %589 }
 0x465   :  { %344 = vrot.lane.b32.xlu0 %v590_v45, %s765_s2 }
 0x466   :  { %v592_v47 = vpop.eup %591 }
 0x467   :  { %v335_v48 = vadd.f32 1.0, %v592_v47 }
 0x469   :  { %v336_v49 = vmul.f32 0.5, %v335_v48 }
 0x46b   :  { %v342_v53 = vmul.f32 %v340_v52, %v336_v49 }
 0x4d7   :  { %v345_v50 = vpop.permute.xlu0 %344 }
 0x4d8   :  { %v347_v51 = vmul.f32 %v345_v50, %v336_v49 }
 0x4da   :  { %349 = vrot.lane.b32.xlu0 %v347_v51, %s770_s28 }
 0x54c   :  { %v350_v54 = vpop.permute.xlu0 %349 }
 0x54d   :  { %v352_v55 = vadd.f32 %v350_v54, %v342_v53 }
 0x54f   :  { %593 = vtanh.f32 %v352_v55 }
 0x559   :  { %v594_v56 = vpop.eup %593 }
 0x55a   :  { %355 = vrot.lane.b32.xlu1 %v594_v56, %s765_s2 }
 0x55e   :  { %258 = vrot.lane.b32.xlu1 %v256_v35, %s770_s28 }
 0x562   :  { %263 = vrot.lane.b32.xlu1 %v250_v26, %s771_s10 }
 0x5cc   :  { %v356_v59 = vpop.permute.xlu1 %355 }
 0x5cd   :  { %v358_v60 = vmul.f32 %v356_v59, %v336_v49 }
 0x5cf   :  { %v371_v61 = vpack.c.bf16 %v358_v60, %v358_v60 }
 0x5d0   :  { %v259_v62 = vpop.permute.xlu1 %258 }
 0x5d1   :  { %261 = vst.msk [vmem:[#allocation11] sm:$0xff] %vm186_vm3, %v259_v62  ;;  %383 = vrot.lane.b32.xlu0 %v371_v61, %s770_s28 }
 0x5d4   :  { %v264_v63 = vpop.permute.xlu1 %263 }
 0x5d5   :  { %266 = vst.msk [vmem:[#allocation13] sm:$0xff] %vm186_vm3, %v264_v63  ;;  %360 = vrot.lane.b32.xlu0 %v358_v60, %s770_s28 }
 0x5d9   :  { %366 = vrot.lane.b32.xlu0 %v352_v55, %s771_s10 }
 0x643   :  { %v384_v0 = vpop.permute.xlu0 %383 }
 0x644   :  { %550 = vmatmul.mubr.msk.bf16.vlgmr.msra.gmra.mrb[4].mxu0 %vm186_vm3, %v384_v0 }
 0x647   :  { %v361_v1 = vpop.permute.xlu0 %360 }
 0x648   :  { %364 = vst.msk [vmem:[#allocation11 + $0x8] sm:$0xff] %vm186_vm3, %v361_v1 }
 0x64b   :  { %v367_v2 = vpop.permute.xlu0 %366 }
 0x64c   :  { %370 = vst.msk [vmem:[#allocation13 + $0x8] sm:$0xff] %vm186_vm3, %v367_v2 }
 0x64d   :  { %694 = shalt.err (!%p691_p8)
}
 0x64e   :  { %s695_s17 = scalar_lea.hbm %s964_s6, 256 }
 0x64f   :  { %p696_p9 = scmp.ne.s32.totalorder %s964_s6, %s695_s17  ;;  %p699_p10 = scmp.lt.u32.totalorder %s695_s17, %s964_s6 }
 0x651   :  { %p701_p11 = pnand %p699_p10, %p696_p9 }
 0x653   :  { %704 = shalt.err (!%p701_p11)
}
 0x654   :  { %463 = dma.vmem_to_hbm [thread:$0]  %s458_s14, 256, %s964_s6, [#allocation12], %s760_s11, %s760_s11, %s761_s12  }
 0x655   :  { %s773_s26 = smov [#allocation13]  }
 0x656   :  { %s469_s1 = sshll.u32 %s773_s26, 4  ;;  %s470_s1 = int_to_ptr.vmem [resolvable:$true] %s469_s1 }
 0x657   :  { %s705_s2 = scalar_lea.vmem %s470_s1, 256  ;;  %p710_p13 = scmp.lt.s32.totalorder %s470_s1, %s470_s1 }
 0x658   :  { %p706_p12 = scmp.ne.s32.totalorder %s470_s1, %s705_s2  ;;  %p711_p0 = scmp.lt.s32.totalorder %s705_s2, %s705_s2 }
 0x65a   :  { %p712_p1 = por %p711_p0, %p710_p13 }
 0x65c   :  { %p713_p2 = pnand %p712_p1, %p706_p12 }
 0x65e   :  { %716 = shalt.err (!%p713_p2)
}
 0x65f   :  { %s717_s27 = scalar_lea.hbm %s965_s7, 256 }
 0x660   :  { %p718_p3 = scmp.ne.s32.totalorder %s965_s7, %s717_s27  ;;  %p721_p4 = scmp.lt.u32.totalorder %s717_s27, %s965_s7 }
 0x662   :  { %p723_p5 = pnand %p721_p4, %p718_p3 }
 0x664   :  { %726 = shalt.err (!%p723_p5)
}
 0x665   :  { %475 = dma.vmem_to_hbm [thread:$0]  %s470_s1, 256, %s965_s7, [#allocation12], %s760_s11, %s760_s11, %s761_s12   ;;  %vm440_vm4 = vcmask 146432  }
 0x666   :  { %v502_v3 = vld [vmem:[%s962_s4 + $0x2] ss:$0 sm:$0xff]  ;;  %s774_s13 = smov [#allocation10]  }
 0x667   :  { %s448_s14 = sshll.u32 %s774_s13, 4  ;;  %s449_s14 = int_to_ptr.vmem [resolvable:$true] %s448_s14 }
 0x668   :  { %s727_s0 = scalar_lea.vmem %s449_s14, 128  ;;  %p732_p7 = scmp.lt.s32.totalorder %s449_s14, %s449_s14 }
 0x669   :  { %p728_p6 = scmp.ne.s32.totalorder %s449_s14, %s727_s0  ;;  %p733_p8 = scmp.lt.s32.totalorder %s727_s0, %s727_s0 }
 0x66b   :  { %p734_p9 = por %p733_p8, %p732_p7 }
 0x66d   :  { %p735_p10 = pnand %p734_p9, %p728_p6 }
 0x717   :  { %v434_v4 = vpop.f32.mrb[4].mxu0 }
 0x718   :  { %v435_v5 = vadd.f32 %v502_v3, %v434_v4  ;;  %v551_v6 = vpop.f32.mrb[5].mxu0 }
 0x719   :  { %v437_v7 = vpop.f32.mrb[6].mxu0 }
 0x71a   :  { %v552_v8 = vpop.f32.mrb[7].mxu0  ;;  %441 = vst.msk [vmem:[#allocation10] sm:$0xff] %vm440_vm4, %v435_v5 }
 0x71b   :  { %738 = shalt.err (!%p735_p10)
}
 0x71c   :  { %s739_s4 = scalar_lea.hbm %s963_s5, 128 }
 0x71d   :  { %p740_p11 = scmp.ne.s32.totalorder %s963_s5, %s739_s4  ;;  %p743_p12 = scmp.lt.u32.totalorder %s739_s4, %s963_s5 }
 0x71f   :  { %p745_p13 = pnand %p743_p12, %p740_p11 }
 0x721   :  { %748 = shalt.err (!%p745_p13)
}
 0x722   :  { %451 = dma.vmem_to_hbm [thread:$0]  %s449_s14, 128, %s963_s5, [#allocation4]  }
 0x723   :  { %755 = dma.done.wait [#allocation4], 128  }
 0x724   :  { %756 = vsyncadd [#allocation4], 4294967168 }
 0x725   :  { %757 = dma.done.wait [#allocation12], 512  }
 0x726   :  { %758 = vsyncadd [#allocation12], 4294966784 }
 0x727   :  { %485 = vsyncpa [#allocation3], 1 }
 0x728   :  { %486 = vsyncpa [#allocation6], 1 }
 0x729   :  { %487 = vsyncpa [#allocation9], 1 }
 0x72a   :  { %488 = vsyncpa [#allocation4], 1 }
 0x72b   :  { %489 = vsyncpa [#allocation12], 1 }

</bundles_post_ra>
